<compile_context>
chip_gen: v7x
topology: tpu7x:2x2x1
jax: 0.10.0
libtpu: 0.0.40
codegen_flags: <defaults>
</compile_context>

<pallas_src>
import jax
import jax.numpy as jnp
from jax.experimental import pallas as pl
from jax.experimental.pallas import tpu as pltpu


def _round_up(n: int, m: int) -> int:
    return ((n + m - 1) // m) * m


# --------------------------------------------------------------------------------------
# Kernel
# --------------------------------------------------------------------------------------
def _head_kernel(x_ref, w1_ref, b1_ref, w2_ref, b2_ref, o_ref):
    # TODO(synk): nn.Dropout(p=0.1) is inference-mode identity here; training-mode
    # dropout would use pltpu.prng_seed + pltpu.prng_random_bits to build the mask.
    x = x_ref[...].astype(jnp.bfloat16)                                # in-kernel cast (VPU)
    h = jnp.dot(x, w1_ref[...], preferred_element_type=jnp.float32)   # MXU, f32 acc (TB, Hp)
    h = h + b1_ref[...]                                                # f32 bias (1, Hp)
    h = jnp.tanh(h.astype(jnp.bfloat16))                               # bf16 EUP (upcast on v5e)
    y = jnp.dot(h, w2_ref[...], preferred_element_type=jnp.float32)   # MXU, f32 acc (TB, Lp)
    y = y + b2_ref[...]                                                # f32 bias (1, Lp)
    o_ref[...] = y.astype(o_ref.dtype)


# --------------------------------------------------------------------------------------
# One-time parameter prep (do this at model load, NOT per forward call)
# --------------------------------------------------------------------------------------
def prepare_params(w_dense, b_dense, w_out, b_out):
    """w_dense: (H, H); b_dense: (H,); w_out: (H, L); b_out: (L,).

    Weights are stored (in, out), i.e. the transpose of nn.Linear's (out, in).
    Returns bf16, lane-padded parameters + the true label count.
    Zero padding keeps the math exact: padded h columns are tanh(0)=0 and the
    matching padded w2 rows are 0, so they contribute nothing to the output.
    """
    H = w_dense.shape[0]
    L = w_out.shape[1]
    Hp = _round_up(H, 128)      # lane-dense intermediate / MXU K-dim of 2nd matmul
    Lp = _round_up(L, 128)      # lane-dense (unmasked) output stores

    w1 = jnp.pad(w_dense, ((0, 0), (0, Hp - H))).astype(jnp.bfloat16)          # (H, Hp)
    b1 = jnp.pad(b_dense, (0, Hp - H)).reshape(1, Hp).astype(jnp.float32)      # (1, Hp)
    w2 = jnp.pad(w_out, ((0, Hp - H), (0, Lp - L))).astype(jnp.bfloat16)       # (Hp, Lp)
    b2 = jnp.pad(b_out, (0, Lp - L)).reshape(1, Lp).astype(jnp.float32)        # (1, Lp)
    return (w1, b1, w2, b2, L)


# --------------------------------------------------------------------------------------
# Forward wrapper
# --------------------------------------------------------------------------------------
def _choose_tb(B: int) -> int:
    if B <= 8:
        return 8
    # >= 2 grid steps (both v7x TCs get work); multiple of 8 sublanes; cap 512.
    return min(512, _round_up((B + 1) // 2, 8))


def _vmem_estimate(TB, H, Hp, Lp, x_bytes, out_bytes) -> int:
    weights = (H * Hp + Hp * Lp) * 2 + (Hp + Lp) * 4                  # single-buffered
    pipeline = 2 * TB * H * x_bytes + 2 * TB * Lp * out_bytes         # double-buffered x/out
    temps = TB * (H * 2 + Hp * 4 + Hp * 2 + Lp * 4)                   # x bf16, h f32/bf16, y f32
    return weights + pipeline + temps


def _invariant_spec(shape):
    """Grid-invariant weight/bias block: single-buffered when supported."""
    idx = lambda i: (0,) * len(shape)
    try:
        return pl.BlockSpec(shape, idx, pipeline_mode=pl.Buffered(1))
    except TypeError:  # older BlockSpec signature without pipeline_mode
        return pl.BlockSpec(shape, idx)


def classification_head(hidden_states, params):
    """hidden_states: (B, H) in its native dtype; params from prepare_params()."""
    w1, b1, w2, b2, num_labels = params
    B, H = hidden_states.shape
    Hp = w1.shape[1]
    Lp = w2.shape[1]
    out_dtype = hidden_states.dtype
    x_bytes = jnp.dtype(hidden_states.dtype).itemsize
    out_bytes = jnp.dtype(out_dtype).itemsize

    # --- batch tiling + VMEM budget (tightest chip: v7x, 64 MiB physical) ------------
    TB = _choose_tb(B)
    budget = 44 << 20
    while TB > 8 and _vmem_estimate(TB, H, Hp, Lp, x_bytes, out_bytes) > budget:
        TB = max(8, _round_up(TB // 2, 8))
    grid = (pl.cdiv(B, TB),)

    est = _vmem_estimate(TB, H, Hp, Lp, x_bytes, out_bytes)
    vmem_limit = min(max(int(1.4 * est), 16 << 20), 64 << 20)

    cost = pl.CostEstimate(
        flops=2 * B * H * Hp + 2 * B * Hp * Lp,
        transcendentals=B * Hp,
        bytes_accessed=(B * H * x_bytes + (H * Hp + Hp * Lp) * 2
                        + (Hp + Lp) * 4 + B * Lp * out_bytes),
    )

    out_padded = pl.pallas_call(
        _head_kernel,
        out_shape=jax.ShapeDtypeStruct((B, Lp), out_dtype),
        grid=grid,
        in_specs=[
            pl.BlockSpec((TB, H), lambda i: (i, 0)),   # activations: pipelined per tile
            _invariant_spec((H, Hp)),                  # weights/biases: VMEM-resident,
            _invariant_spec((1, Hp)),                  # single-buffered
            _invariant_spec((Hp, Lp)),
            _invariant_spec((1, Lp)),
        ],
        out_specs=pl.BlockSpec((TB, Lp), lambda i: (i, 0)),
        compiler_params=pltpu.CompilerParams(
            dimension_semantics=("parallel",),         # 2x on v7x (2 TCs); no-op on v5e/v6e
            vmem_limit_bytes=vmem_limit,
        ),
        cost_estimate=cost,
    )(hidden_states, w1, b1, w2, b2)

    if num_labels == Lp:
        return out_padded
    return out_padded[:, :num_labels]


def _reference(hidden_states, w_dense, b_dense, w_out, b_out):
    h = jnp.tanh(hidden_states @ w_dense + b_dense)
    return h @ w_out + b_out


if __name__ == "__main__":
    batch = 8
    hidden_size = 32
    num_labels = 4

    key = jax.random.PRNGKey(0)
    k_x, k_w1, k_b1, k_w2, k_b2 = jax.random.split(key, 5)

    x = jax.random.normal(k_x, (batch, hidden_size), dtype=jnp.float32)

    # Deterministic params (shapes per nn.Linear(hidden, hidden) / nn.Linear(hidden, labels)),
    # stored as (in, out) == PyTorch weight.T so the kernel does x @ W + b.
    bound1 = 1.0 / jnp.sqrt(hidden_size)
    w_dense = jax.random.uniform(k_w1, (hidden_size, hidden_size), jnp.float32, -bound1, bound1)
    b_dense = jax.random.uniform(k_b1, (hidden_size,), jnp.float32, -bound1, bound1)
    w_out = jax.random.uniform(k_w2, (hidden_size, num_labels), jnp.float32, -bound1, bound1)
    b_out = jax.random.uniform(k_b2, (num_labels,), jnp.float32, -bound1, bound1)

    # One-time prep (model load), then the per-call forward touches only x + bf16 params.
    params = prepare_params(w_dense, b_dense, w_out, b_out)

    out = classification_head(x, params)
    out = jax.block_until_ready(out)

    ref = _reference(x, w_dense, b_dense, w_out, b_out)
    assert out.shape == (batch, num_labels), out.shape
    # bf16 matmul operands / bf16 tanh (f32 accumulation) -> relaxed tolerance vs f32 reference.
    assert jnp.allclose(out, ref, atol=2e-2, rtol=2e-2), jnp.max(jnp.abs(out - ref))

    print("KERNEL_OK")
</pallas_src>

<mosaic_0001>
module attributes {stable_mosaic.version = 11 : i64} {
  func.func @_head_kernel(%arg0: i32, %arg1: memref<8x32xf32, #tpu.memory_space<vmem>>, %arg2: memref<32x128xbf16, #tpu.memory_space<vmem>>, %arg3: memref<1x128xf32, #tpu.memory_space<vmem>>, %arg4: memref<128x128xbf16, #tpu.memory_space<vmem>>, %arg5: memref<1x128xf32, #tpu.memory_space<vmem>>, %arg6: memref<8x128xf32, #tpu.memory_space<vmem>>) attributes {dimension_semantics = [#tpu.dimension_semantics<parallel>], iteration_bounds = array<i64: 1>, scalar_prefetch = 0 : i64, scratch_operands = 0 : i64, tpu.core_type = #tpu.core_type<tc>, window_params = [{transform_indices = @transform_0, window_bounds = array<i64: 8, 32>}, {pipeline_mode = #tpu.pipeline_mode<synchronous>, transform_indices = @transform_1, window_bounds = array<i64: 32, 128>}, {pipeline_mode = #tpu.pipeline_mode<synchronous>, transform_indices = @transform_2, window_bounds = array<i64: 1, 128>}, {pipeline_mode = #tpu.pipeline_mode<synchronous>, transform_indices = @transform_3, window_bounds = array<i64: 128, 128>}, {pipeline_mode = #tpu.pipeline_mode<synchronous>, transform_indices = @transform_4, window_bounds = array<i64: 1, 128>}, {transform_indices = @transform_5, window_bounds = array<i64: 8, 128>}]} {
    %c0 = arith.constant 0 : index
    %c0_0 = arith.constant 0 : index
    %0 = vector.load %arg1[%c0, %c0_0] : memref<8x32xf32, #tpu.memory_space<vmem>>, vector<8x32xf32>
    %1 = arith.truncf %0 : vector<8x32xf32> to vector<8x32xbf16>
    %c0_1 = arith.constant 0 : index
    %c0_2 = arith.constant 0 : index
    %2 = vector.load %arg2[%c0_1, %c0_2] : memref<32x128xbf16, #tpu.memory_space<vmem>>, vector<32x128xbf16>
    %cst = arith.constant dense<0.000000e+00> : vector<8x128xf32>
    %3 = tpu.matmul %1, %2, %cst {dimension_numbers = #tpu.dot_dimension_numbers<[1], [0], [0], [1], [0, 0, 1, 1], [], []>} : vector<8x32xbf16>, vector<32x128xbf16>, vector<8x128xf32> -> vector<8x128xf32>
    %c0_3 = arith.constant 0 : index
    %c0_4 = arith.constant 0 : index
    %4 = vector.load %arg3[%c0_3, %c0_4] : memref<1x128xf32, #tpu.memory_space<vmem>>, vector<1x128xf32>
    %5 = vector.broadcast %4 : vector<1x128xf32> to vector<8x128xf32>
    %6 = arith.addf %3, %5 : vector<8x128xf32>
    %7 = arith.truncf %6 : vector<8x128xf32> to vector<8x128xbf16>
    %8 = math.tanh %7 : vector<8x128xbf16>
    %c0_5 = arith.constant 0 : index
    %c0_6 = arith.constant 0 : index
    %9 = vector.load %arg4[%c0_5, %c0_6] : memref<128x128xbf16, #tpu.memory_space<vmem>>, vector<128x128xbf16>
    %cst_7 = arith.constant dense<0.000000e+00> : vector<8x128xf32>
    %10 = tpu.matmul %8, %9, %cst_7 {dimension_numbers = #tpu.dot_dimension_numbers<[1], [0], [0], [1], [0, 0, 1, 1], [], []>} : vector<8x128xbf16>, vector<128x128xbf16>, vector<8x128xf32> -> vector<8x128xf32>
    %c0_8 = arith.constant 0 : index
    %c0_9 = arith.constant 0 : index
    %11 = vector.load %arg5[%c0_8, %c0_9] : memref<1x128xf32, #tpu.memory_space<vmem>>, vector<1x128xf32>
    %12 = vector.broadcast %11 : vector<1x128xf32> to vector<8x128xf32>
    %13 = arith.addf %10, %12 : vector<8x128xf32>
    %c0_10 = arith.constant 0 : index
    %c0_11 = arith.constant 0 : index
    %14 = vector.load %arg6[%c0_10, %c0_11] : memref<8x128xf32, #tpu.memory_space<vmem>>, vector<8x128xf32>
    tpu.vector_store %arg6[%c0_10, %c0_11], %13 {strides = array<i32>} : memref<8x128xf32, #tpu.memory_space<vmem>>, vector<8x128xf32>,
    return
  }
  func.func @transform_0(%arg0: i32) -> (i32, i32) {
    %c0_i32 = arith.constant 0 : i32
    %c0_i32_0 = arith.constant 0 : i32
    return %arg0, %c0_i32 : i32, i32
  }
  func.func @transform_1(%arg0: i32) -> (i32, i32) {
    %c0_i32 = arith.constant 0 : i32
    %c0_i32_0 = arith.constant 0 : i32
    %c0_i32_1 = arith.constant 0 : i32
    return %c0_i32, %c0_i32_0 : i32, i32
  }
  func.func @transform_2(%arg0: i32) -> (i32, i32) {
    %c0_i32 = arith.constant 0 : i32
    %c0_i32_0 = arith.constant 0 : i32
    %c0_i32_1 = arith.constant 0 : i32
    return %c0_i32, %c0_i32_0 : i32, i32
  }
  func.func @transform_3(%arg0: i32) -> (i32, i32) {
    %c0_i32 = arith.constant 0 : i32
    %c0_i32_0 = arith.constant 0 : i32
    %c0_i32_1 = arith.constant 0 : i32
    return %c0_i32, %c0_i32_0 : i32, i32
  }
  func.func @transform_4(%arg0: i32) -> (i32, i32) {
    %c0_i32 = arith.constant 0 : i32
    %c0_i32_0 = arith.constant 0 : i32
    %c0_i32_1 = arith.constant 0 : i32
    return %c0_i32, %c0_i32_0 : i32, i32
  }
  func.func @transform_5(%arg0: i32) -> (i32, i32) {
    %c0_i32 = arith.constant 0 : i32
    %c0_i32_0 = arith.constant 0 : i32
    return %arg0, %c0_i32 : i32, i32
  }
}

</mosaic_0001>

<bundles_post_ra>
// kernel: tpu_custom_call.1
= control target key start
LH: loop header
LB: loop body
LE: loop exit
PB: predicated region body
PF: predicated region fallthrough
CT: control target
= control target key end

     0   :  { %10 = vsyncpa [#allocation3], 0  ;;  %s525_s0 = inlined_call_operand.hbm [shape: f32[8,32], index: 0, kind: input, shape index: {}]   ;;  %s526_s1 = inlined_call_operand.hbm [shape: bf16[32,128], index: 1, kind: input, shape index: {}]   ;;  %s527_s2 = inlined_call_operand.vmem [shape: f32[1,128], index: 2, kind: input, shape index: {}]   ;;  %s528_s3 = inlined_call_operand.hbm [shape: bf16[128,128], index: 3, kind: input, shape index: {}]   ;;  %s529_s4 = inlined_call_operand.vmem [shape: f32[1,128], index: 4, kind: input, shape index: {}]   ;;  %s530_s5 = inlined_call_operand.hbm [shape: f32[8,128], index: 5, kind: output, shape index: {}]  }
   0x1   :  { %11 = vsyncpa [#allocation6], 0 }
   0x2   :  { %12 = vsyncpa [#allocation4], 0  ;;  %s427_s18 = smov [#allocation5]   ;;  %s333_s22 = scalar_lea.hbm %s526_s1, 256 }
   0x3   :  { %s28_s19 = sshll.u32 %s427_s18, 4  ;;  %p334_p0 = scmp.ne.s32.totalorder %s526_s1, %s333_s22  ;;  %s29_s19 = int_to_ptr.vmem [resolvable:$true] %s28_s19 }
   0x4   :  { %p337_p1 = scmp.lt.u32.totalorder %s333_s22, %s526_s1 }
   0x6   :  { %p339_p2 = pnand %p337_p1, %p334_p0 }
   0x8   :  { %342 = shalt.err (!%p339_p2)
}
   0x9   :  { %s343_s27 = scalar_lea.vmem %s29_s19, 256  ;;  %p348_p4 = scmp.lt.s32.totalorder %s29_s19, %s29_s19 }
   0xa   :  { %p344_p3 = scmp.ne.s32.totalorder %s29_s19, %s343_s27  ;;  %p349_p5 = scmp.lt.s32.totalorder %s343_s27, %s343_s27 }
   0xc   :  { %p350_p6 = por %p349_p5, %p348_p4 }
   0xe   :  { %p351_p7 = pnand %p350_p6, %p344_p3 }
  0x10   :  { %354 = shalt.err (!%p351_p7)
}
  0x11   :  { %s428_s28 = smov 64   ;;  %s429_s29 = smov 4  }
  0x12   :  { %34 = dma.hbm_to_vmem [thread:$0]  %s526_s1, 256, %s29_s19, [#allocation6], %s428_s28, %s428_s28, %s429_s29  }
  0x13   :  { %s430_s7 = smov [#allocation2]   ;;  %s431_s9 = smov [#allocation7]  }
  0x14   :  { %s19_s8 = sshll.u32 %s430_s7, 4  ;;  %s42_s10 = sshll.u32 %s431_s9, 4  ;;  %s20_s8 = int_to_ptr.vmem [resolvable:$true] %s19_s8  ;;  %s43_s10 = int_to_ptr.vmem [resolvable:$true] %s42_s10 }
  0x15   :  { %s355_s13 = scalar_lea.hbm %s525_s0, 128 }
  0x16   :  { %p356_p8 = scmp.ne.s32.totalorder %s525_s0, %s355_s13  ;;  %p359_p9 = scmp.lt.u32.totalorder %s355_s13, %s525_s0 }
  0x18   :  { %p361_p10 = pnand %p359_p9, %p356_p8 }
  0x1a   :  { %364 = shalt.err (!%p361_p10)
}
  0x1b   :  { %s365_s1 = scalar_lea.vmem %s20_s8, 128  ;;  %p370_p12 = scmp.lt.s32.totalorder %s20_s8, %s20_s8 }
  0x1c   :  { %p366_p11 = scmp.ne.s32.totalorder %s20_s8, %s365_s1  ;;  %p371_p13 = scmp.lt.s32.totalorder %s365_s1, %s365_s1 }
  0x1e   :  { %p372_p0 = por %p371_p13, %p370_p12 }
  0x20   :  { %p373_p1 = pnand %p372_p0, %p366_p11 }
  0x22   :  { %376 = shalt.err (!%p373_p1)
}
  0x23   :  { %22 = dma.hbm_to_vmem [thread:$0]  %s525_s0, 128, %s20_s8, [#allocation3]  }
  0x24   :  { %s377_s22 = scalar_lea.hbm %s528_s3, 1024 }
  0x25   :  { %p378_p2 = scmp.ne.s32.totalorder %s528_s3, %s377_s22  ;;  %p381_p3 = scmp.lt.u32.totalorder %s377_s22, %s528_s3 }
  0x27   :  { %p383_p4 = pnand %p381_p3, %p378_p2 }
  0x29   :  { %386 = shalt.err (!%p383_p4)
}
  0x2a   :  { %s387_s27 = scalar_lea.vmem %s43_s10, 1024  ;;  %p392_p6 = scmp.lt.s32.totalorder %s43_s10, %s43_s10 }
  0x2b   :  { %p388_p5 = scmp.ne.s32.totalorder %s43_s10, %s387_s27  ;;  %p393_p7 = scmp.lt.s32.totalorder %s387_s27, %s387_s27 }
  0x2d   :  { %p394_p8 = por %p393_p7, %p392_p6 }
  0x2f   :  { %p395_p9 = pnand %p394_p8, %p388_p5 }
  0x31   :  { %398 = shalt.err (!%p395_p9)
}
  0x32   :  { %48 = dma.hbm_to_vmem [thread:$0]  %s528_s3, 1024, %s43_s10, [#allocation6], %s428_s28, %s428_s28, %s429_s29  }
  0x33   :  { %421 = dma.done.wait [#allocation3], 128  }
  0x34   :  { %422 = vsyncadd [#allocation3], 4294967168 }
  0x35   :  { %423 = dma.done.wait [#allocation6], 1280  }
  0x36   :  { %424 = vsyncadd [#allocation6], 4294966016  ;;  %v432_v0 = vmov 0.0   ;;  %vm433_vm0 = vmmov 0   ;;  %v321_v1 = vld [vmem:[#allocation5] sm:$0xff]   ;;  %v322_v2 = vld [vmem:[#allocation5 + $0x8] sm:$0xff]  }
  0x37   :  { %285 = vmatprep.subr.bf16.mxu0 %v432_v0  ;;  %289 = vmatprep.mubr.msk.bf16.mxu0 %vm433_vm0, %v432_v0  ;;  %v61_v3 = vld [vmem:[#allocation2] sm:$0xff]  ;;  %v323_v4 = vld [vmem:[#allocation7] sm:$0xff]   ;;  %vm86_vm1 = vcmask 261120   ;;  %v325_v7 = vld [vmem:[#allocation7 + $0x10] sm:$0xff]   ;;  %s434_s7 = smov [#allocation8]  }
  0x38   :  { %293 = vmatprep.subr.bf16.mxu1 %v432_v0  ;;  %309 = vmatprep.mubr.msk.bf16.mxu1 %vm433_vm0, %v432_v0  ;;  %v62_v5 = vpack.c.bf16 %v61_v3, %v61_v3  ;;  %v324_v6 = vld [vmem:[#allocation7 + $0x8] sm:$0xff]   ;;  %v326_v8 = vld [vmem:[#allocation7 + $0x18] sm:$0xff]   ;;  %v327_v9 = vld [vmem:[#allocation7 + $0x20] sm:$0xff]   ;;  %s250_s8 = sshll.u32 %s434_s7, 4  ;;  %s251_s8 = int_to_ptr.vmem [resolvable:$true] %s250_s8 }
  0x39   :  { %286 = vmatpush3.bf16.msra.mxu0 %v321_v1  ;;  %294 = vmatpush3.bf16.msra.mxu1 %v323_v4  ;;  %v328_v10 = vld [vmem:[#allocation7 + $0x28] sm:$0xff]   ;;  %v329_v11 = vld [vmem:[#allocation7 + $0x30] sm:$0xff]   ;;  %v330_v12 = vld [vmem:[#allocation7 + $0x38] sm:$0xff]   ;;  %p404_p11 = scmp.lt.s32.totalorder %s251_s8, %s251_s8 }
  0x3a   :  { %287 = vmatprep.subr.bf16.mxu0 %v432_v0  ;;  %295 = vmatprep.subr.bf16.mxu1 %v432_v0  ;;  %v260_v13 = vld [vmem:[%s527_s2] ss:$0 sm:$0xff]  ;;  %s399_s2 = scalar_lea.vmem %s251_s8, 128 }
  0x3b   :  { %v264_v21 = vld [vmem:[%s529_s4] ss:$0 sm:$0xff]  ;;  %p400_p10 = scmp.ne.s32.totalorder %s251_s8, %s399_s2  ;;  %p405_p12 = scmp.lt.s32.totalorder %s399_s2, %s399_s2 }
  0x3d   :  { %288 = vmatpush3.bf16.msra.mxu0 %v322_v2  ;;  %296 = vmatpush3.bf16.msra.mxu1 %v324_v6  ;;  %p406_p13 = por %p405_p12, %p404_p11 }
  0x3e   :  { %297 = vmatprep.subr.bf16.mxu1 %v432_v0 }
  0x3f   :  { %p407_p0 = pnand %p406_p13, %p400_p10 }
  0x40   :  { %290 = vmatmul.mubr.msk.bf16.vlgmr.msra.gmra.mrb[0].mxu0 %vm86_vm1, %v62_v5 }
  0x41   :  { %298 = vmatpush3.bf16.msra.mxu1 %v325_v7 }
  0x42   :  { %299 = vmatprep.subr.bf16.mxu1 %v432_v0 }
  0x45   :  { %300 = vmatpush3.bf16.msra.mxu1 %v326_v8 }
  0x46   :  { %301 = vmatprep.subr.bf16.mxu1 %v432_v0 }
  0x49   :  { %302 = vmatpush3.bf16.msra.mxu1 %v327_v9 }
  0x4a   :  { %303 = vmatprep.subr.bf16.mxu1 %v432_v0 }
  0x4d   :  { %304 = vmatpush3.bf16.msra.mxu1 %v328_v10 }
  0x4e   :  { %305 = vmatprep.subr.bf16.mxu1 %v432_v0 }
  0x51   :  { %306 = vmatpush3.bf16.msra.mxu1 %v329_v11 }
  0x52   :  { %307 = vmatprep.subr.bf16.mxu1 %v432_v0 }
  0x55   :  { %308 = vmatpush3.bf16.msra.mxu1 %v330_v12 }
 0x113   :  { %v124_v14 = vpop.f32.mrb[0].mxu0 }
 0x114   :  { %v125_v15 = vadd.f32 %v260_v13, %v124_v14  ;;  %v291_v16 = vpop.f32.mrb[1].mxu0 }
 0x115   :  { %v127_v17 = vpop.f32.mrb[2].mxu0 }
 0x116   :  { %v130_v18 = vpack.c.bf16 %v125_v15, %v125_v15  ;;  %v292_v19 = vpop.f32.mrb[3].mxu0 }
 0x118   :  { %331 = vtanh.bf16 %v130_v18 }
 0x123   :  { %v332_v20 = vpop.eup %331 }
 0x124   :  { %310 = vmatmul.mubr.bf16.vlgmr.msra.gmra.mrb[0].mxu1 %v332_v20 }
 0x1f7   :  { %v237_v22 = vpop.f32.mrb[0].mxu1 }
 0x1f8   :  { %v238_v23 = vadd.f32 %v264_v21, %v237_v22  ;;  %v311_v24 = vpop.f32.mrb[1].mxu1 }
 0x1f9   :  { %v240_v25 = vpop.f32.mrb[2].mxu1 }
 0x1fa   :  { %243 = vst [vmem:[#allocation8] sm:$0xff] %v238_v23  ;;  %v312_v26 = vpop.f32.mrb[3].mxu1 }
 0x1fb   :  { %410 = shalt.err (!%p407_p0)
}
 0x1fc   :  { %s411_s4 = scalar_lea.hbm %s530_s5, 128 }
 0x1fd   :  { %p412_p1 = scmp.ne.s32.totalorder %s530_s5, %s411_s4  ;;  %p415_p2 = scmp.lt.u32.totalorder %s411_s4, %s530_s5 }
 0x1ff   :  { %p417_p3 = pnand %p415_p2, %p412_p1 }
 0x201   :  { %420 = shalt.err (!%p417_p3)
}
 0x202   :  { %253 = dma.vmem_to_hbm [thread:$0]  %s251_s8, 128, %s530_s5, [#allocation4]  }
 0x203   :  { %425 = dma.done.wait [#allocation4], 128  }
 0x204   :  { %426 = vsyncadd [#allocation4], 4294967168 }
 0x205   :  { %257 = vsyncpa [#allocation3], 1 }
 0x206   :  { %258 = vsyncpa [#allocation6], 1 }
 0x207   :  { %259 = vsyncpa [#allocation4], 1 }

</bundles_post_ra>
